<compile_context>
chip_gen: v7x
topology: tpu7x:2x2x1
jax: 0.10.0
libtpu: 0.0.40
codegen_flags: <defaults>
</compile_context>

<pallas_src>
import functools

import jax
import jax.numpy as jnp
from jax import lax
from jax.experimental import pallas as pl
from jax.experimental.pallas import tpu as pltpu


def _neg_pearson_kernel(pred_ref, targ_ref, out_ref,
                        px_ref, py_ref, sx_ref, sy_ref, sxy_ref, sx2_ref, sy2_ref,
                        *, seq_len, block_t):
    """Grid = (batch_tiles, t_tiles); T (reduction) axis last.

    Scratch (all (block_b, 1) f32, VMEM):
      px, py            : per-row pilot means (from the first T chunk)
      sx, sy, sxy, sx2, sy2 : per-row centered raw moments accumulated over T
    Output block (block_b, 128): per-row (1 - r) broadcast across lanes,
    written only in the T epilogue.
    """
    j = pl.program_id(1)

    x = pred_ref[...].astype(jnp.float32)   # (TB, TT)
    y = targ_ref[...].astype(jnp.float32)   # (TB, TT)

    @pl.when(j == 0)
    def _init():
        # Pilot mean from the first chunk (the first T tile is always full).
        inv_bt = jnp.float32(1.0 / block_t)
        px_ref[...] = jnp.sum(x, axis=-1, keepdims=True) * inv_bt
        py_ref[...] = jnp.sum(y, axis=-1, keepdims=True) * inv_bt
        sx_ref[...] = jnp.zeros_like(sx_ref)
        sy_ref[...] = jnp.zeros_like(sy_ref)
        sxy_ref[...] = jnp.zeros_like(sxy_ref)
        sx2_ref[...] = jnp.zeros_like(sx2_ref)
        sy2_ref[...] = jnp.zeros_like(sy2_ref)

    # Center with the per-row pilot mean (Pearson r is shift-invariant, so this
    # is exact while keeping the raw-moment formula well conditioned).
    xc = x - px_ref[...]
    yc = y - py_ref[...]

    if seq_len % block_t != 0:
        # Last T tile is partial: zero padded columns *after* centering so they
        # contribute nothing to any moment. (Static Python branch.)
        col = j * block_t + lax.broadcasted_iota(jnp.int32, x.shape, 1)
        valid = col < seq_len
        xc = jnp.where(valid, xc, 0.0)
        yc = jnp.where(valid, yc, 0.0)

    sx_ref[...] += jnp.sum(xc, axis=-1, keepdims=True)
    sy_ref[...] += jnp.sum(yc, axis=-1, keepdims=True)
    sxy_ref[...] += jnp.sum(xc * yc, axis=-1, keepdims=True)
    sx2_ref[...] += jnp.sum(xc * xc, axis=-1, keepdims=True)
    sy2_ref[...] += jnp.sum(yc * yc, axis=-1, keepdims=True)

    @pl.when(j == pl.num_programs(1) - 1)
    def _finalize():
        n = jnp.float32(seq_len)
        sx = sx_ref[...]
        sy = sy_ref[...]
        num = n * sxy_ref[...] - sx * sy
        var_x = n * sx2_ref[...] - sx * sx
        var_y = n * sy2_ref[...] - sy * sy
        r = num * lax.rsqrt(var_x * var_y)          # (TB, 1)
        out_ref[...] = jnp.broadcast_to(1.0 - r, out_ref.shape)


def _pick_tiles(batch, seq_len, itemsize, vmem_limit_bytes):
    """Pick (block_b, block_t) so the *real* working set fits the VMEM budget.

    Per grid step the footprint is roughly
        block_b * block_t * (2 inputs * 2 pipeline buffers * itemsize
                             + ~6 live f32 temporaries)
    plus negligible (block_b, 1) scratches and the (block_b, 128) output block.
    """
    if seq_len > 2048:
        block_t = 2048                    # multiple of 128 -> always a legal tile
    else:
        block_t = seq_len                 # single T tile (block == full dim)

    budget = int(vmem_limit_bytes * 0.6)  # headroom for output block / spills
    bytes_per_row = block_t * (4 * itemsize + 6 * 4)
    bb = max(1, budget // max(1, bytes_per_row))
    if batch <= bb:
        return batch, block_t             # single batch tile (== full dim)
    return max(8, (bb // 8) * 8), block_t


def neg_pearson_loss(predictions, targets, *, block_b=None, block_t=None):
    """Pallas-backed NegPearsonLoss.forward. Returns a scalar float32.

    Feed bf16 (or whatever the upstream activation dtype is) directly: the
    kernel casts to f32 internally and is HBM-bandwidth bound, so halving the
    input bytes is the single biggest wall-clock lever.
    """
    if predictions.ndim == 1:
        predictions = predictions.reshape(1, -1)
    if targets.ndim == 1:
        targets = targets.reshape(1, -1)

    B, T = predictions.shape
    p_item = jnp.dtype(predictions.dtype).itemsize
    t_item = jnp.dtype(targets.dtype).itemsize
    itemsize = max(p_item, t_item)

    # Generation-aware VMEM budget (v7x: 64 MiB/TC -> ~48 MiB scoped;
    # v5e/v6e: 128 MiB -> 96 MiB scoped).
    try:
        vmem_cap = int(pltpu.get_tpu_info().vmem_capacity_bytes)
    except Exception:
        vmem_cap = 64 << 20
    vmem_limit = min((vmem_cap * 3) // 4, 96 << 20)

    auto_bb, auto_bt = _pick_tiles(B, T, itemsize, vmem_limit)
    if block_t is None:
        block_t = auto_bt
    if block_b is None:
        block_b = auto_bb

    # Sanitize overrides: last dim must be a multiple of 128 or the full T;
    # sublane dim a multiple of 8 or the full B.
    block_t = min(block_t, T)
    if block_t < T:
        block_t = max(128, (block_t // 128) * 128)
        block_t = min(block_t, T)
    block_b = min(block_b, B)
    if block_b < B:
        block_b = max(8, (block_b // 8) * 8)
        block_b = min(block_b, B)

    grid = (pl.cdiv(B, block_b), pl.cdiv(T, block_t))

    cost = pl.CostEstimate(
        flops=12 * B * T,
        transcendentals=B,                       # one rsqrt per row
        bytes_accessed=B * T * (p_item + t_item) + B * 128 * 4,
    )

    kernel = functools.partial(_neg_pearson_kernel, seq_len=T, block_t=block_t)

    per_row = pl.pallas_call(
        kernel,
        out_shape=jax.ShapeDtypeStruct((B, 128), jnp.float32),
        grid_spec=pltpu.PrefetchScalarGridSpec(
            num_scalar_prefetch=0,
            grid=grid,
            in_specs=[
                pl.BlockSpec((block_b, block_t), lambda i, j: (i, j)),
                pl.BlockSpec((block_b, block_t), lambda i, j: (i, j)),
            ],
            # Per-batch-tile output block, resident across the T reduction axis.
            out_specs=pl.BlockSpec((block_b, 128), lambda i, j: (i, 0)),
            scratch_shapes=[pltpu.VMEM((block_b, 1), jnp.float32)
                            for _ in range(7)],
        ),
        compiler_params=pltpu.CompilerParams(
            # Batch tiles are independent -> megacore-shardable on v7x;
            # T is the (sequential) reduction axis.
            dimension_semantics=("parallel", "arbitrary"),
            vmem_limit_bytes=int(vmem_limit),
        ),
        cost_estimate=cost,
    )(predictions, targets)

    # Partial last batch block is clipped on writeback, so only real rows exist.
    return jnp.mean(per_row[:, 0])


if __name__ == "__main__":
    key = jax.random.PRNGKey(0)
    k1, k2, k3, k4, k5, k6 = jax.random.split(key, 6)

    # Pure-JAX reference replicating the PyTorch math exactly
    # (standardize with unbiased std, then the Pearson sum formula).
    def ref(p, y):
        p = p.astype(jnp.float32)
        y = y.astype(jnp.float32)
        n = p.shape[1]
        pn = (p - p.mean(-1, keepdims=True)) / p.std(-1, keepdims=True, ddof=1)
        yn = (y - y.mean(-1, keepdims=True)) / y.std(-1, keepdims=True, ddof=1)
        sx, sy = pn.sum(-1), yn.sum(-1)
        sxy = (pn * yn).sum(-1)
        sx2, sy2 = (pn * pn).sum(-1), (yn * yn).sum(-1)
        r = (n * sxy - sx * sy) / jnp.sqrt((n * sx2 - sx**2) * (n * sy2 - sy**2))
        return jnp.mean(1.0 - r)

    # --- Test 1: small rPPG-like signals with a per-row DC offset (single tile)
    B, T = 4, 128
    t = jnp.arange(T, dtype=jnp.float32)
    base = jnp.sin(2.0 * jnp.pi * t / 32.0)[None, :] * jnp.ones((B, 1), jnp.float32)
    offset = 10.0 + 5.0 * jnp.arange(B, dtype=jnp.float32)[:, None]
    targets = base + offset + 0.05 * jax.random.normal(k1, (B, T), jnp.float32)
    predictions = targets + 0.3 * jax.random.normal(k2, (B, T), jnp.float32)

    loss = neg_pearson_loss(predictions, targets)
    jax.block_until_ready(loss)
    assert jnp.allclose(loss, ref(predictions, targets), atol=1e-4, rtol=1e-4)

    # --- Test 2: exercise the 2-D tiled path: partial batch tile + partial
    # (masked) T tile, grid = (3, 3).
    B2, T2 = 20, 320
    t2 = jnp.arange(T2, dtype=jnp.float32)
    base2 = jnp.cos(2.0 * jnp.pi * t2 / 24.0)[None, :] * jnp.ones((B2, 1), jnp.float32)
    targets2 = base2 + 15.0 + 0.05 * jax.random.normal(k3, (B2, T2), jnp.float32)
    predictions2 = targets2 + 0.5 * jax.random.normal(k4, (B2, T2), jnp.float32)

    loss2 = neg_pearson_loss(predictions2, targets2, block_b=8, block_t=128)
    jax.block_until_ready(loss2)
    assert jnp.allclose(loss2, ref(predictions2, targets2), atol=1e-4, rtol=1e-4)

    # --- Test 3: bf16 inputs (half the HBM traffic); reference sees the same
    # bf16-quantized values, kernel does its math in f32.
    B3, T3 = 6, 256
    t3 = jnp.arange(T3, dtype=jnp.float32)
    base3 = jnp.sin(2.0 * jnp.pi * t3 / 40.0)[None, :] * jnp.ones((B3, 1), jnp.float32)
    targ3 = (base3 + 5.0 + 0.05 * jax.random.normal(k5, (B3, T3), jnp.float32))
    pred3 = targ3 + 0.4 * jax.random.normal(k6, (B3, T3), jnp.float32)
    targ3_bf = targ3.astype(jnp.bfloat16)
    pred3_bf = pred3.astype(jnp.bfloat16)

    loss3 = neg_pearson_loss(pred3_bf, targ3_bf)
    jax.block_until_ready(loss3)
    assert jnp.allclose(loss3, ref(pred3_bf, targ3_bf), atol=1e-3, rtol=1e-3)

    print("KERNEL_OK")
</pallas_src>

<mosaic_0001>
module attributes {stable_mosaic.version = 11 : i64} {
  func.func @_neg_pearson_kernel(%arg0: i32, %arg1: i32, %arg2: memref<4x128xf32, #tpu.memory_space<vmem>>, %arg3: memref<4x128xf32, #tpu.memory_space<vmem>>, %arg4: memref<4x128xf32, #tpu.memory_space<vmem>>, %arg5: memref<4x1xf32, #tpu.memory_space<vmem>>, %arg6: memref<4x1xf32, #tpu.memory_space<vmem>>, %arg7: memref<4x1xf32, #tpu.memory_space<vmem>>, %arg8: memref<4x1xf32, #tpu.memory_space<vmem>>, %arg9: memref<4x1xf32, #tpu.memory_space<vmem>>, %arg10: memref<4x1xf32, #tpu.memory_space<vmem>>, %arg11: memref<4x1xf32, #tpu.memory_space<vmem>>) attributes {dimension_semantics = [#tpu.dimension_semantics<parallel>, #tpu.dimension_semantics<arbitrary>], iteration_bounds = array<i64: 1, 1>, scalar_prefetch = 0 : i64, scratch_operands = 7 : i64, tpu.core_type = #tpu.core_type<tc>, window_params = [{transform_indices = @transform_0, window_bounds = array<i64: 4, 128>}, {transform_indices = @transform_1, window_bounds = array<i64: 4, 128>}, {transform_indices = @transform_2, window_bounds = array<i64: 4, 128>}]} {
    %c0 = arith.constant 0 : index
    %c0_0 = arith.constant 0 : index
    %0 = vector.load %arg2[%c0, %c0_0] : memref<4x128xf32, #tpu.memory_space<vmem>>, vector<4x128xf32>
    %c0_1 = arith.constant 0 : index
    %c0_2 = arith.constant 0 : index
    %1 = vector.load %arg3[%c0_1, %c0_2] : memref<4x128xf32, #tpu.memory_space<vmem>>, vector<4x128xf32>
    %c0_i32 = arith.constant 0 : i32
    %2 = arith.cmpi eq, %arg1, %c0_i32 : i32
    %3 = arith.extui %2 : i1 to i32
    %c0_i32_3 = arith.constant 0 : i32
    %4 = arith.cmpi ne, %3, %c0_i32_3 : i32
    scf.if %4 {
      %cst_34 = arith.constant dense<0.000000e+00> : vector<4xf32>
      %42 = vector.multi_reduction <add>, %0, %cst_34 [1] : vector<4x128xf32> to vector<4xf32>
      %43 = vector.shape_cast %42 : vector<4xf32> to vector<4x1xf32>
      %cst_35 = arith.constant 7.812500e-03 : f32
      %44 = vector.broadcast %cst_35 : f32 to vector<4x1xf32>
      %45 = arith.mulf %43, %44 : vector<4x1xf32>
      %c0_36 = arith.constant 0 : index
      %c0_37 = arith.constant 0 : index
      %46 = vector.load %arg5[%c0_36, %c0_37] : memref<4x1xf32, #tpu.memory_space<vmem>>, vector<4x1xf32>
      tpu.vector_store %arg5[%c0_36, %c0_37], %45 {strides = array<i32>} : memref<4x1xf32, #tpu.memory_space<vmem>>, vector<4x1xf32>,
      %cst_38 = arith.constant dense<0.000000e+00> : vector<4xf32>
      %47 = vector.multi_reduction <add>, %1, %cst_38 [1] : vector<4x128xf32> to vector<4xf32>
      %48 = vector.shape_cast %47 : vector<4xf32> to vector<4x1xf32>
      %cst_39 = arith.constant 7.812500e-03 : f32
      %49 = vector.broadcast %cst_39 : f32 to vector<4x1xf32>
      %50 = arith.mulf %48, %49 : vector<4x1xf32>
      %c0_40 = arith.constant 0 : index
      %c0_41 = arith.constant 0 : index
      %51 = vector.load %arg6[%c0_40, %c0_41] : memref<4x1xf32, #tpu.memory_space<vmem>>, vector<4x1xf32>
      tpu.vector_store %arg6[%c0_40, %c0_41], %50 {strides = array<i32>} : memref<4x1xf32, #tpu.memory_space<vmem>>, vector<4x1xf32>,
      %cst_42 = arith.constant 0.000000e+00 : f32
      %52 = vector.broadcast %cst_42 : f32 to vector<4x1xf32>
      %c0_43 = arith.constant 0 : index
      %c0_44 = arith.constant 0 : index
      %53 = vector.load %arg7[%c0_43, %c0_44] : memref<4x1xf32, #tpu.memory_space<vmem>>, vector<4x1xf32>
      tpu.vector_store %arg7[%c0_43, %c0_44], %52 {strides = array<i32>} : memref<4x1xf32, #tpu.memory_space<vmem>>, vector<4x1xf32>,
      %cst_45 = arith.constant 0.000000e+00 : f32
      %54 = vector.broadcast %cst_45 : f32 to vector<4x1xf32>
      %c0_46 = arith.constant 0 : index
      %c0_47 = arith.constant 0 : index
      %55 = vector.load %arg8[%c0_46, %c0_47] : memref<4x1xf32, #tpu.memory_space<vmem>>, vector<4x1xf32>
      tpu.vector_store %arg8[%c0_46, %c0_47], %54 {strides = array<i32>} : memref<4x1xf32, #tpu.memory_space<vmem>>, vector<4x1xf32>,
      %cst_48 = arith.constant 0.000000e+00 : f32
      %56 = vector.broadcast %cst_48 : f32 to vector<4x1xf32>
      %c0_49 = arith.constant 0 : index
      %c0_50 = arith.constant 0 : index
      %57 = vector.load %arg9[%c0_49, %c0_50] : memref<4x1xf32, #tpu.memory_space<vmem>>, vector<4x1xf32>
      tpu.vector_store %arg9[%c0_49, %c0_50], %56 {strides = array<i32>} : memref<4x1xf32, #tpu.memory_space<vmem>>, vector<4x1xf32>,
      %cst_51 = arith.constant 0.000000e+00 : f32
      %58 = vector.broadcast %cst_51 : f32 to vector<4x1xf32>
      %c0_52 = arith.constant 0 : index
      %c0_53 = arith.constant 0 : index
      %59 = vector.load %arg10[%c0_52, %c0_53] : memref<4x1xf32, #tpu.memory_space<vmem>>, vector<4x1xf32>
      tpu.vector_store %arg10[%c0_52, %c0_53], %58 {strides = array<i32>} : memref<4x1xf32, #tpu.memory_space<vmem>>, vector<4x1xf32>,
      %cst_54 = arith.constant 0.000000e+00 : f32
      %60 = vector.broadcast %cst_54 : f32 to vector<4x1xf32>
      %c0_55 = arith.constant 0 : index
      %c0_56 = arith.constant 0 : index
      %61 = vector.load %arg11[%c0_55, %c0_56] : memref<4x1xf32, #tpu.memory_space<vmem>>, vector<4x1xf32>
      tpu.vector_store %arg11[%c0_55, %c0_56], %60 {strides = array<i32>} : memref<4x1xf32, #tpu.memory_space<vmem>>, vector<4x1xf32>,
    } else {
    }
    %c0_4 = arith.constant 0 : index
    %c0_5 = arith.constant 0 : index
    %5 = vector.load %arg5[%c0_4, %c0_5] : memref<4x1xf32, #tpu.memory_space<vmem>>, vector<4x1xf32>
    %6 = vector.broadcast %5 : vector<4x1xf32> to vector<4x128xf32>
    %7 = arith.subf %0, %6 : vector<4x128xf32>
    %c0_6 = arith.constant 0 : index
    %c0_7 = arith.constant 0 : index
    %8 = vector.load %arg6[%c0_6, %c0_7] : memref<4x1xf32, #tpu.memory_space<vmem>>, vector<4x1xf32>
    %9 = vector.broadcast %8 : vector<4x1xf32> to vector<4x128xf32>
    %10 = arith.subf %1, %9 : vector<4x128xf32>
    %c0_8 = arith.constant 0 : index
    %c0_9 = arith.constant 0 : index
    %11 = vector.load %arg7[%c0_8, %c0_9] : memref<4x1xf32, #tpu.memory_space<vmem>>, vector<4x1xf32>
    %cst = arith.constant dense<0.000000e+00> : vector<4xf32>
    %12 = vector.multi_reduction <add>, %7, %cst [1] : vector<4x128xf32> to vector<4xf32>
    %13 = vector.shape_cast %12 : vector<4xf32> to vector<4x1xf32>
    %14 = arith.addf %11, %13 : vector<4x1xf32>
    %c0_10 = arith.constant 0 : index
    %c0_11 = arith.constant 0 : index
    %15 = vector.load %arg7[%c0_10, %c0_11] : memref<4x1xf32, #tpu.memory_space<vmem>>, vector<4x1xf32>
    tpu.vector_store %arg7[%c0_10, %c0_11], %14 {strides = array<i32>} : memref<4x1xf32, #tpu.memory_space<vmem>>, vector<4x1xf32>,
    %c0_12 = arith.constant 0 : index
    %c0_13 = arith.constant 0 : index
    %16 = vector.load %arg8[%c0_12, %c0_13] : memref<4x1xf32, #tpu.memory_space<vmem>>, vector<4x1xf32>
    %cst_14 = arith.constant dense<0.000000e+00> : vector<4xf32>
    %17 = vector.multi_reduction <add>, %10, %cst_14 [1] : vector<4x128xf32> to vector<4xf32>
    %18 = vector.shape_cast %17 : vector<4xf32> to vector<4x1xf32>
    %19 = arith.addf %16, %18 : vector<4x1xf32>
    %c0_15 = arith.constant 0 : index
    %c0_16 = arith.constant 0 : index
    %20 = vector.load %arg8[%c0_15, %c0_16] : memref<4x1xf32, #tpu.memory_space<vmem>>, vector<4x1xf32>
    tpu.vector_store %arg8[%c0_15, %c0_16], %19 {strides = array<i32>} : memref<4x1xf32, #tpu.memory_space<vmem>>, vector<4x1xf32>,
    %c0_17 = arith.constant 0 : index
    %c0_18 = arith.constant 0 : index
    %21 = vector.load %arg9[%c0_17, %c0_18] : memref<4x1xf32, #tpu.memory_space<vmem>>, vector<4x1xf32>
    %22 = arith.mulf %7, %10 : vector<4x128xf32>
    %cst_19 = arith.constant dense<0.000000e+00> : vector<4xf32>
    %23 = vector.multi_reduction <add>, %22, %cst_19 [1] : vector<4x128xf32> to vector<4xf32>
    %24 = vector.shape_cast %23 : vector<4xf32> to vector<4x1xf32>
    %25 = arith.addf %21, %24 : vector<4x1xf32>
    %c0_20 = arith.constant 0 : index
    %c0_21 = arith.constant 0 : index
    %26 = vector.load %arg9[%c0_20, %c0_21] : memref<4x1xf32, #tpu.memory_space<vmem>>, vector<4x1xf32>
    tpu.vector_store %arg9[%c0_20, %c0_21], %25 {strides = array<i32>} : memref<4x1xf32, #tpu.memory_space<vmem>>, vector<4x1xf32>,
    %c0_22 = arith.constant 0 : index
    %c0_23 = arith.constant 0 : index
    %27 = vector.load %arg10[%c0_22, %c0_23] : memref<4x1xf32, #tpu.memory_space<vmem>>, vector<4x1xf32>
    %28 = arith.mulf %7, %7 : vector<4x128xf32>
    %cst_24 = arith.constant dense<0.000000e+00> : vector<4xf32>
    %29 = vector.multi_reduction <add>, %28, %cst_24 [1] : vector<4x128xf32> to vector<4xf32>
    %30 = vector.shape_cast %29 : vector<4xf32> to vector<4x1xf32>
    %31 = arith.addf %27, %30 : vector<4x1xf32>
    %c0_25 = arith.constant 0 : index
    %c0_26 = arith.constant 0 : index
    %32 = vector.load %arg10[%c0_25, %c0_26] : memref<4x1xf32, #tpu.memory_space<vmem>>, vector<4x1xf32>
    tpu.vector_store %arg10[%c0_25, %c0_26], %31 {strides = array<i32>} : memref<4x1xf32, #tpu.memory_space<vmem>>, vector<4x1xf32>,
    %c0_27 = arith.constant 0 : index
    %c0_28 = arith.constant 0 : index
    %33 = vector.load %arg11[%c0_27, %c0_28] : memref<4x1xf32, #tpu.memory_space<vmem>>, vector<4x1xf32>
    %34 = arith.mulf %10, %10 : vector<4x128xf32>
    %cst_29 = arith.constant dense<0.000000e+00> : vector<4xf32>
    %35 = vector.multi_reduction <add>, %34, %cst_29 [1] : vector<4x128xf32> to vector<4xf32>
    %36 = vector.shape_cast %35 : vector<4xf32> to vector<4x1xf32>
    %37 = arith.addf %33, %36 : vector<4x1xf32>
    %c0_30 = arith.constant 0 : index
    %c0_31 = arith.constant 0 : index
    %38 = vector.load %arg11[%c0_30, %c0_31] : memref<4x1xf32, #tpu.memory_space<vmem>>, vector<4x1xf32>
    tpu.vector_store %arg11[%c0_30, %c0_31], %37 {strides = array<i32>} : memref<4x1xf32, #tpu.memory_space<vmem>>, vector<4x1xf32>,
    %c0_i32_32 = arith.constant 0 : i32
    %39 = arith.cmpi eq, %arg1, %c0_i32_32 : i32
    %40 = arith.extui %39 : i1 to i32
    %c0_i32_33 = arith.constant 0 : i32
    %41 = arith.cmpi ne, %40, %c0_i32_33 : i32
    scf.if %41 {
      %c0_34 = arith.constant 0 : index
      %c0_35 = arith.constant 0 : index
      %42 = vector.load %arg7[%c0_34, %c0_35] : memref<4x1xf32, #tpu.memory_space<vmem>>, vector<4x1xf32>
      %c0_36 = arith.constant 0 : index
      %c0_37 = arith.constant 0 : index
      %43 = vector.load %arg8[%c0_36, %c0_37] : memref<4x1xf32, #tpu.memory_space<vmem>>, vector<4x1xf32>
      %c0_38 = arith.constant 0 : index
      %c0_39 = arith.constant 0 : index
      %44 = vector.load %arg9[%c0_38, %c0_39] : memref<4x1xf32, #tpu.memory_space<vmem>>, vector<4x1xf32>
      %cst_40 = arith.constant 1.280000e+02 : f32
      %45 = vector.broadcast %cst_40 : f32 to vector<4x1xf32>
      %46 = arith.mulf %45, %44 : vector<4x1xf32>
      %47 = arith.mulf %42, %43 : vector<4x1xf32>
      %48 = arith.subf %46, %47 : vector<4x1xf32>
      %c0_41 = arith.constant 0 : index
      %c0_42 = arith.constant 0 : index
      %49 = vector.load %arg10[%c0_41, %c0_42] : memref<4x1xf32, #tpu.memory_space<vmem>>, vector<4x1xf32>
      %cst_43 = arith.constant 1.280000e+02 : f32
      %50 = vector.broadcast %cst_43 : f32 to vector<4x1xf32>
      %51 = arith.mulf %50, %49 : vector<4x1xf32>
      %52 = arith.mulf %42, %42 : vector<4x1xf32>
      %53 = arith.subf %51, %52 : vector<4x1xf32>
      %c0_44 = arith.constant 0 : index
      %c0_45 = arith.constant 0 : index
      %54 = vector.load %arg11[%c0_44, %c0_45] : memref<4x1xf32, #tpu.memory_space<vmem>>, vector<4x1xf32>
      %cst_46 = arith.constant 1.280000e+02 : f32
      %55 = vector.broadcast %cst_46 : f32 to vector<4x1xf32>
      %56 = arith.mulf %55, %54 : vector<4x1xf32>
      %57 = arith.mulf %43, %43 : vector<4x1xf32>
      %58 = arith.subf %56, %57 : vector<4x1xf32>
      %59 = arith.mulf %53, %58 : vector<4x1xf32>
      %60 = math.rsqrt %59 : vector<4x1xf32>
      %61 = arith.mulf %48, %60 : vector<4x1xf32>
      %cst_47 = arith.constant 1.000000e+00 : f32
      %62 = vector.broadcast %cst_47 : f32 to vector<4x1xf32>
      %63 = arith.subf %62, %61 : vector<4x1xf32>
      %64 = vector.shape_cast %63 : vector<4x1xf32> to vector<4x1xf32>
      %65 = vector.broadcast %64 : vector<4x1xf32> to vector<4x128xf32>
      %c0_48 = arith.constant 0 : index
      %c0_49 = arith.constant 0 : index
      %66 = vector.load %arg4[%c0_48, %c0_49] : memref<4x128xf32, #tpu.memory_space<vmem>>, vector<4x128xf32>
      tpu.vector_store %arg4[%c0_48, %c0_49], %65 {strides = array<i32>} : memref<4x128xf32, #tpu.memory_space<vmem>>, vector<4x128xf32>,
    } else {
    }
    return
  }
  func.func @transform_0(%arg0: i32, %arg1: i32) -> (i32, i32) {
    %c0_i32 = arith.constant 0 : i32
    return %arg0, %arg1 : i32, i32
  }
  func.func @transform_1(%arg0: i32, %arg1: i32) -> (i32, i32) {
    %c0_i32 = arith.constant 0 : i32
    return %arg0, %arg1 : i32, i32
  }
  func.func @transform_2(%arg0: i32, %arg1: i32) -> (i32, i32) {
    %c0_i32 = arith.constant 0 : i32
    %c0_i32_0 = arith.constant 0 : i32
    return %arg0, %c0_i32 : i32, i32
  }
}

</mosaic_0001>

<bundles_post_ra>
// kernel: tpu_custom_call.1
= control target key start
LH: loop header
LB: loop body
LE: loop exit
PB: predicated region body
PF: predicated region fallthrough
CT: control target
= control target key end

     0   :  { %7 = vsyncpa [#allocation10], 0  ;;  %s307_s0 = inlined_call_operand.hbm [shape: f32[4,128], index: 0, kind: input, shape index: {}]   ;;  %s308_s1 = inlined_call_operand.hbm [shape: f32[4,128], index: 1, kind: input, shape index: {}]   ;;  %s309_s2 = inlined_call_operand.hbm [shape: f32[4,128], index: 2, kind: output, shape index: {}]  }
   0x1   :  { %8 = vsyncpa [#allocation13], 0 }
   0x2   :  { %9 = vsyncpa [#allocation11], 0  ;;  %s232_s9 = smov [#allocation9]   ;;  %s233_s11 = smov [#allocation12]  }
   0x3   :  { %s16_s10 = sshll.u32 %s232_s9, 4  ;;  %s26_s12 = sshll.u32 %s233_s11, 4  ;;  %s17_s10 = int_to_ptr.vmem [resolvable:$true] %s16_s10  ;;  %s27_s12 = int_to_ptr.vmem [resolvable:$true] %s26_s12 }
   0x4   :  { %s160_s15 = scalar_lea.hbm %s307_s0, 64 }
   0x5   :  { %p161_p0 = scmp.ne.s32.totalorder %s307_s0, %s160_s15  ;;  %p164_p1 = scmp.lt.u32.totalorder %s160_s15, %s307_s0 }
   0x7   :  { %p166_p2 = pnand %p164_p1, %p161_p0 }
   0x9   :  { %169 = shalt.err (!%p166_p2)
}
   0xa   :  { %s170_s20 = scalar_lea.vmem %s17_s10, 64  ;;  %p175_p4 = scmp.lt.s32.totalorder %s17_s10, %s17_s10 }
   0xb   :  { %p171_p3 = scmp.ne.s32.totalorder %s17_s10, %s170_s20  ;;  %p176_p5 = scmp.lt.s32.totalorder %s170_s20, %s170_s20 }
   0xd   :  { %p177_p6 = por %p176_p5, %p175_p4 }
   0xf   :  { %p178_p7 = pnand %p177_p6, %p171_p3 }
  0x11   :  { %181 = shalt.err (!%p178_p7)
}
  0x12   :  { %19 = dma.hbm_to_vmem [thread:$0]  %s307_s0, 64, %s17_s10, [#allocation10]  }
  0x13   :  { %s182_s25 = scalar_lea.hbm %s308_s1, 64 }
  0x14   :  { %p183_p8 = scmp.ne.s32.totalorder %s308_s1, %s182_s25  ;;  %p186_p9 = scmp.lt.u32.totalorder %s182_s25, %s308_s1 }
  0x16   :  { %p188_p10 = pnand %p186_p9, %p183_p8 }
  0x18   :  { %191 = shalt.err (!%p188_p10)
}
  0x19   :  { %s192_s30 = scalar_lea.vmem %s27_s12, 64  ;;  %p197_p12 = scmp.lt.s32.totalorder %s27_s12, %s27_s12 }
  0x1a   :  { %p193_p11 = scmp.ne.s32.totalorder %s27_s12, %s192_s30  ;;  %p198_p13 = scmp.lt.s32.totalorder %s192_s30, %s192_s30 }
  0x1c   :  { %p199_p0 = por %p198_p13, %p197_p12 }
  0x1e   :  { %p200_p1 = pnand %p199_p0, %p193_p11 }
  0x20   :  { %203 = shalt.err (!%p200_p1)
}
  0x21   :  { %29 = dma.hbm_to_vmem [thread:$0]  %s308_s1, 64, %s27_s12, [#allocation13]  }
  0x22   :  { %226 = dma.done.wait [#allocation10], 64  }
  0x23   :  { %227 = vsyncadd [#allocation10], 4294967232 }
  0x24   :  { %228 = dma.done.wait [#allocation13], 64  }
  0x25   :  { %229 = vsyncadd [#allocation13], 4294967232  ;;  %vm42_vm0 = vcmask 1043456   ;;  %v36_v0 = vld [vmem:[#allocation9] sm:$0xf]  ;;  %v234_v4 = vmov 0  }
  0x26   :  { %v37_v1 = vld [vmem:[#allocation12] sm:$0xf]  ;;  %v43_v2 = vsel %vm42_vm0, %v36_v0, 0.0  ;;  %156 = vset.pattern.permute.xlu1 %v234_v4  ;;  %157 = vset.pattern.permute.xlu0 %v234_v4  ;;  %vm47_vm1 = vcmask 3072   ;;  %v235_v11 = vmov 0.0   ;;  %s236_s1 = smov [#allocation14]  }
  0x27   :  { %44 = vadd.xlane.f32.xlu0 %v43_v2  ;;  %v49_v3 = vsel %vm42_vm0, %v37_v1, 0.0  ;;  %54 = vst.msk [vmem:[#allocation4] sm:$0xf] %vm47_vm1, %v235_v11  ;;  %55 = vst.msk [vmem:[#allocation5] sm:$0xf] %vm47_vm1, %v235_v11  ;;  %s141_s4 = sshll.u32 %s236_s1, 4  ;;  %s142_s4 = int_to_ptr.vmem [resolvable:$true] %s141_s4 }
  0x28   :  { %56 = vst.msk [vmem:[#allocation6] sm:$0xf] %vm47_vm1, %v235_v11  ;;  %57 = vst.msk [vmem:[#allocation7] sm:$0xf] %vm47_vm1, %v235_v11  ;;  %s204_s5 = scalar_lea.vmem %s142_s4, 64  ;;  %p209_p3 = scmp.lt.s32.totalorder %s142_s4, %s142_s4 }
  0x29   :  { %58 = vst.msk [vmem:[#allocation8] sm:$0xf] %vm47_vm1, %v235_v11  ;;  %p205_p2 = scmp.ne.s32.totalorder %s142_s4, %s204_s5  ;;  %p210_p4 = scmp.lt.s32.totalorder %s204_s5, %s204_s5 }
  0x2b   :  { %50 = vadd.xlane.f32.xlu0 %v49_v3  ;;  %p211_p5 = por %p210_p4, %p209_p3 }
  0x2d   :  { %p212_p6 = pnand %p211_p5, %p205_p2 }
  0x2e   :  { %v73_v24 = vld [vmem:[#allocation4] sm:$0xf]  ;;  %v81_v27 = vld [vmem:[#allocation5] sm:$0xf] }
  0x2f   :  { %v94_v28 = vld [vmem:[#allocation7] sm:$0xf]  ;;  %v87_v36 = vld [vmem:[#allocation6] sm:$0xf] }
  0x30   :  { %v101_v33 = vld [vmem:[#allocation8] sm:$0xf] }
  0xb4   :  { %v45_v5 = vpop.xlane.xlu0 %44 }
  0xb5   :  { %v46_v6 = vmul.f32 0.0078125, %v45_v5 }
  0xb7   :  { %48 = vst.msk [vmem:[#allocation2] sm:$0xf] %vm47_vm1, %v46_v6 }
  0xb8   :  { %v51_v7 = vpop.xlane.xlu0 %50 }
  0xb9   :  { %v52_v8 = vmul.f32 0.0078125, %v51_v7 }
  0xbb   :  { %53 = vst.msk [vmem:[#allocation3] sm:$0xf] %vm47_vm1, %v52_v8 }
  0xbe   :  { %v59_v9 = vld [vmem:[#allocation2] sm:$0xf] }
  0xbf   :  { %62 = vperm.xlu1 %156, %v59_v9  }
  0xc2   :  { %v66_v10 = vld [vmem:[#allocation3] sm:$0xf] }
  0xc3   :  { %69 = vperm.xlu1 %156, %v66_v10  }
 0x13e   :  { %v63_v12 = vpop.permute.xlu1 %62 }
 0x13f   :  { %v65_v13 = vsub.f32 %v36_v0, %v63_v12 }
 0x141   :  { %v75_v14 = vsel %vm42_vm0, %v65_v13, 0.0  ;;  %v95_v15 = vmul.f32 %v65_v13, %v65_v13 }
 0x142   :  { %76 = vadd.xlane.f32.xlu0 %v75_v14  ;;  %v70_v16 = vpop.permute.xlu1 %69 }
 0x143   :  { %v72_v17 = vsub.f32 %v37_v1, %v70_v16  ;;  %v96_v18 = vsel %vm42_vm0, %v95_v15, 0.0 }
 0x145   :  { %v82_v19 = vsel %vm42_vm0, %v72_v17, 0.0  ;;  %v102_v20 = vmul.f32 %v72_v17, %v72_v17  ;;  %v88_v22 = vmul.f32 %v72_v17, %v65_v13 }
 0x146   :  { %97 = vadd.xlane.f32.xlu0 %v96_v18  ;;  %83 = vadd.xlane.f32.xlu1 %v82_v19 }
 0x147   :  { %v103_v21 = vsel %vm42_vm0, %v102_v20, 0.0  ;;  %v89_v23 = vsel %vm42_vm0, %v88_v22, 0.0 }
 0x14a   :  { %104 = vadd.xlane.f32.xlu0 %v103_v21 }
 0x14e   :  { %90 = vadd.xlane.f32.xlu0 %v89_v23 }
 0x1cf   :  { %v77_v25 = vpop.xlane.xlu0 %76 }
 0x1d0   :  { %v78_v26 = vadd.f32 %v77_v25, %v73_v24 }
 0x1d2   :  { %80 = vst.msk [vmem:[#allocation4] sm:$0xf] %vm47_vm1, %v78_v26 }
 0x1d3   :  { %v84_v29 = vpop.xlane.xlu1 %83  ;;  %v98_v30 = vpop.xlane.xlu0 %97 }
 0x1d4   :  { %v85_v31 = vadd.f32 %v84_v29, %v81_v27  ;;  %v99_v32 = vadd.f32 %v98_v30, %v94_v28 }
 0x1d6   :  { %86 = vst.msk [vmem:[#allocation5] sm:$0xf] %vm47_vm1, %v85_v31  ;;  %100 = vst.msk [vmem:[#allocation7] sm:$0xf] %vm47_vm1, %v99_v32 }
 0x1d7   :  { %v105_v34 = vpop.xlane.xlu0 %104 }
 0x1d8   :  { %v106_v35 = vadd.f32 %v105_v34, %v101_v33 }
 0x1d9   :  { %v111_v40 = vld [vmem:[#allocation4] sm:$0xf] }
 0x1da   :  { %107 = vst.msk [vmem:[#allocation8] sm:$0xf] %vm47_vm1, %v106_v35  ;;  %v119_v44 = vmul.f32 %v111_v40, %v111_v40 }
 0x1db   :  { %v91_v37 = vpop.xlane.xlu0 %90 }
 0x1dc   :  { %v92_v38 = vadd.f32 %v91_v37, %v87_v36 }
 0x1dd   :  { %v117_v39 = vld [vmem:[#allocation7] sm:$0xf]  ;;  %v112_v41 = vld [vmem:[#allocation5] sm:$0xf] }
 0x1de   :  { %93 = vst.msk [vmem:[#allocation6] sm:$0xf] %vm47_vm1, %v92_v38  ;;  %v118_v42 = vmul.f32 128.0, %v117_v39  ;;  %v123_v46 = vmul.f32 %v112_v41, %v112_v41  ;;  %v115_v52 = vmul.f32 %v112_v41, %v111_v40 }
 0x1e0   :  { %v120_v47 = vsub.f32 %v118_v42, %v119_v44 }
 0x1e1   :  { %v121_v43 = vld [vmem:[#allocation8] sm:$0xf] }
 0x1e2   :  { %v122_v45 = vmul.f32 128.0, %v121_v43 }
 0x1e4   :  { %v124_v48 = vsub.f32 %v122_v45, %v123_v46 }
 0x1e5   :  { %v113_v50 = vld [vmem:[#allocation6] sm:$0xf] }
 0x1e6   :  { %v125_v49 = vmul.f32 %v124_v48, %v120_v47  ;;  %v114_v51 = vmul.f32 128.0, %v113_v50 }
 0x1e8   :  { %158 = vrsqrt.f32 %v125_v49  ;;  %v116_v53 = vsub.f32 %v114_v51, %v115_v52 }
 0x1f2   :  { %v159_v54 = vpop.eup %158 }
 0x1f3   :  { %v127_v55 = vmul.f32 %v159_v54, %v116_v53 }
 0x1f5   :  { %v128_v56 = vsub.f32 1.0, %v127_v55 }
 0x1f7   :  { %131 = vperm.xlu0 %157, %v128_v56  }
 0x276   :  { %v132_v57 = vpop.permute.xlu0 %131 }
 0x277   :  { %134 = vst [vmem:[#allocation14] sm:$0xf] %v132_v57 }
 0x278   :  { %215 = shalt.err (!%p212_p6)
}
 0x279   :  { %s216_s8 = scalar_lea.hbm %s309_s2, 64 }
 0x27a   :  { %p217_p7 = scmp.ne.s32.totalorder %s309_s2, %s216_s8  ;;  %p220_p8 = scmp.lt.u32.totalorder %s216_s8, %s309_s2 }
 0x27c   :  { %p222_p9 = pnand %p220_p8, %p217_p7 }
 0x27e   :  { %225 = shalt.err (!%p222_p9)
}
 0x27f   :  { %144 = dma.vmem_to_hbm [thread:$0]  %s142_s4, 64, %s309_s2, [#allocation11]  }
 0x280   :  { %230 = dma.done.wait [#allocation11], 64  }
 0x281   :  { %231 = vsyncadd [#allocation11], 4294967232 }
 0x282   :  { %148 = vsyncpa [#allocation10], 1 }
 0x283   :  { %149 = vsyncpa [#allocation13], 1 }
 0x284   :  { %150 = vsyncpa [#allocation11], 1 }

</bundles_post_ra>
